<compile_context>
chip_gen: v6e
topology: v6e:2x2x1
jax: 0.10.0
libtpu: 0.0.40
codegen_flags: <defaults>
</compile_context>

<pallas_src>
import functools

import jax
import jax.numpy as jnp
from jax.experimental import pallas as pl
from jax.experimental.pallas import tpu as pltpu


# ----------------------------------------------------------------------------
# Pallas kernels: tiled (tm, Cin) @ (Cin, 4*Cout) [+ bias] on the MXU
# ----------------------------------------------------------------------------
def _deconv2x2_bias_kernel(x_ref, w_ref, b_ref, o_ref):
    acc = jnp.dot(x_ref[...], w_ref[...], preferred_element_type=jnp.float32)
    acc = acc + b_ref[...]                      # (1, 4*Cout) broadcasts over rows
    o_ref[...] = acc.astype(o_ref.dtype)


def _deconv2x2_nobias_kernel(x_ref, w_ref, o_ref):
    acc = jnp.dot(x_ref[...], w_ref[...], preferred_element_type=jnp.float32)
    o_ref[...] = acc.astype(o_ref.dtype)


# ----------------------------------------------------------------------------
# Module wrapper (NCHW boundary, PyTorch ConvTranspose2d weight layout)
# ----------------------------------------------------------------------------
def upsample_conv_transpose2x2(x, weight, bias=None, *, tm=512, use_bf16=True):
    """ConvTranspose2d(kernel_size=2, stride=2).

    x:      (B, Cin, H, W)          NCHW (PyTorch module boundary)
    weight: (Cin, Cout, 2, 2)       PyTorch ConvTranspose2d weight layout
    bias:   (Cout,) or None
    returns (B, Cout, 2H, 2W)
    """
    B, Cin, H, W = x.shape
    assert weight.shape[0] == Cin and weight.shape[2:] == (2, 2), weight.shape
    Cout = weight.shape[1]
    N = 4 * Cout
    M = B * H * W
    out_dtype = x.dtype
    cdt = jnp.bfloat16 if use_bf16 else jnp.float32

    # One boundary transpose: NCHW -> (B*H*W, Cin); channels-last = MXU lane dim.
    xf = jnp.transpose(x, (0, 2, 3, 1)).reshape(M, Cin).astype(cdt)
    # (Cin, Cout, kh, kw) -> (Cin, kh*kw*Cout), co fastest -> lane-dense output columns.
    wm = jnp.transpose(weight, (0, 2, 3, 1)).reshape(Cin, N).astype(cdt)

    # Row-tile size: full rows if small, otherwise a packing-friendly multiple of 32.
    if M <= tm:
        tm_eff = M
    else:
        tm_eff = max(32, (tm // 32) * 32)
    grid = (pl.cdiv(M, tm_eff),)

    in_specs = [
        pl.BlockSpec((tm_eff, Cin), lambda i: (i, 0)),   # activation row tile
        pl.BlockSpec((Cin, N), lambda i: (0, 0)),        # full weight (small, resident)
    ]
    args = [xf, wm]
    if bias is not None:
        # bias[co] replicated across the 4 (kh, kw) taps -> (1, 4*Cout), added in f32.
        bm = jnp.tile(bias.astype(jnp.float32).reshape(1, Cout), (1, 4))
        in_specs.append(pl.BlockSpec((1, N), lambda i: (0, 0)))
        args.append(bm)
        kernel = _deconv2x2_bias_kernel
    else:
        kernel = _deconv2x2_nobias_kernel

    y = pl.pallas_call(
        kernel,
        out_shape=jax.ShapeDtypeStruct((M, N), out_dtype),
        grid=grid,
        in_specs=in_specs,
        out_specs=pl.BlockSpec((tm_eff, N), lambda i: (i, 0)),
        compiler_params=pltpu.CompilerParams(
            dimension_semantics=("parallel",),   # megacore sharding on v7x
        ),
    )(*args)

    # 2x2 pixel-shuffle (depth-to-space) in NHWC, then back to NCHW at the boundary.
    y = y.reshape(B, H, W, 2, 2, Cout)
    y = jnp.transpose(y, (0, 1, 3, 2, 4, 5)).reshape(B, 2 * H, 2 * W, Cout)
    return jnp.transpose(y, (0, 3, 1, 2))


# ----------------------------------------------------------------------------
# Independent reference (pure jnp, direct ConvTranspose2d semantics)
# ----------------------------------------------------------------------------
def _conv_transpose2x2_ref(x, weight, bias):
    B, Cin, H, W = x.shape
    Cout = weight.shape[1]
    y = jnp.einsum(
        "bchw,cokl->bohkwl",
        x.astype(jnp.float32),
        weight.astype(jnp.float32),
    ).reshape(B, Cout, 2 * H, 2 * W)
    if bias is not None:
        y = y + bias.astype(jnp.float32).reshape(1, Cout, 1, 1)
    return y


if __name__ == "__main__":
    key = jax.random.PRNGKey(0)
    k_x, k_w, k_b = jax.random.split(key, 3)

    # Small shapes consistent with the module: batch=2, Cin=8, Cout=32, spatial=16.
    # (4*Cout = 128 -> lane-dense output tile.)
    B, Cin, Cout, H, W = 2, 8, 32, 16, 16
    x = jax.random.normal(k_x, (B, Cin, H, W), jnp.float32)
    weight = 0.1 * jax.random.normal(k_w, (Cin, Cout, 2, 2), jnp.float32)
    bias = 0.05 * jax.random.normal(k_b, (Cout,), jnp.float32)

    # tm=128 so the demo exercises the multi-block pipelined path (grid = (4,)).
    fwd = jax.jit(functools.partial(upsample_conv_transpose2x2, tm=128))
    out = fwd(x, weight, bias)
    jax.block_until_ready(out)

    assert out.shape == (B, Cout, 2 * H, 2 * W), out.shape
    assert bool(jnp.isfinite(out).all())

    # Check against the reference computed from the same bf16-rounded operands
    # (the kernel multiplies bf16 operands with exact f32 accumulation).
    x_q = x.astype(jnp.bfloat16).astype(jnp.float32)
    w_q = weight.astype(jnp.bfloat16).astype(jnp.float32)
    ref = _conv_transpose2x2_ref(x_q, w_q, bias)
    err = float(jnp.max(jnp.abs(out.astype(jnp.float32) - ref)))
    assert err < 1e-3, f"max abs err {err}"

    print("KERNEL_OK")
</pallas_src>

<mosaic_0001>
module attributes {stable_mosaic.version = 11 : i64} {
  func.func @_deconv2x2_bias_kernel(%arg0: i32, %arg1: memref<128x8xbf16, #tpu.memory_space<vmem>>, %arg2: memref<8x128xbf16, #tpu.memory_space<vmem>>, %arg3: memref<1x128xf32, #tpu.memory_space<vmem>>, %arg4: memref<128x128xf32, #tpu.memory_space<vmem>>) attributes {dimension_semantics = [#tpu.dimension_semantics<parallel>], iteration_bounds = array<i64: 4>, scalar_prefetch = 0 : i64, scratch_operands = 0 : i64, tpu.core_type = #tpu.core_type<tc>, window_params = [{transform_indices = @transform_0, window_bounds = array<i64: 128, 8>}, {pipeline_mode = #tpu.pipeline_mode<synchronous>, transform_indices = @transform_1, window_bounds = array<i64: 8, 128>}, {pipeline_mode = #tpu.pipeline_mode<synchronous>, transform_indices = @transform_2, window_bounds = array<i64: 1, 128>}, {transform_indices = @transform_3, window_bounds = array<i64: 128, 128>}]} {
    %c0 = arith.constant 0 : index
    %c0_0 = arith.constant 0 : index
    %0 = vector.load %arg1[%c0, %c0_0] : memref<128x8xbf16, #tpu.memory_space<vmem>>, vector<128x8xbf16>
    %c0_1 = arith.constant 0 : index
    %c0_2 = arith.constant 0 : index
    %1 = vector.load %arg2[%c0_1, %c0_2] : memref<8x128xbf16, #tpu.memory_space<vmem>>, vector<8x128xbf16>
    %cst = arith.constant dense<0.000000e+00> : vector<128x128xf32>
    %2 = tpu.matmul %0, %1, %cst {dimension_numbers = #tpu.dot_dimension_numbers<[1], [0], [0], [1], [0, 0, 1, 1], [], []>} : vector<128x8xbf16>, vector<8x128xbf16>, vector<128x128xf32> -> vector<128x128xf32>
    %c0_3 = arith.constant 0 : index
    %c0_4 = arith.constant 0 : index
    %3 = vector.load %arg3[%c0_3, %c0_4] : memref<1x128xf32, #tpu.memory_space<vmem>>, vector<1x128xf32>
    %4 = vector.broadcast %3 : vector<1x128xf32> to vector<128x128xf32>
    %5 = arith.addf %2, %4 : vector<128x128xf32>
    %c0_5 = arith.constant 0 : index
    %c0_6 = arith.constant 0 : index
    %6 = vector.load %arg4[%c0_5, %c0_6] : memref<128x128xf32, #tpu.memory_space<vmem>>, vector<128x128xf32>
    tpu.vector_store %arg4[%c0_5, %c0_6], %5 {strides = array<i32>} : memref<128x128xf32, #tpu.memory_space<vmem>>, vector<128x128xf32>,
    return
  }
  func.func @transform_0(%arg0: i32) -> (i32, i32) {
    %c0_i32 = arith.constant 0 : i32
    %c0_i32_0 = arith.constant 0 : i32
    return %arg0, %c0_i32 : i32, i32
  }
  func.func @transform_1(%arg0: i32) -> (i32, i32) {
    %c0_i32 = arith.constant 0 : i32
    %c0_i32_0 = arith.constant 0 : i32
    %c0_i32_1 = arith.constant 0 : i32
    return %c0_i32, %c0_i32_0 : i32, i32
  }
  func.func @transform_2(%arg0: i32) -> (i32, i32) {
    %c0_i32 = arith.constant 0 : i32
    %c0_i32_0 = arith.constant 0 : i32
    %c0_i32_1 = arith.constant 0 : i32
    return %c0_i32, %c0_i32_0 : i32, i32
  }
  func.func @transform_3(%arg0: i32) -> (i32, i32) {
    %c0_i32 = arith.constant 0 : i32
    %c0_i32_0 = arith.constant 0 : i32
    return %arg0, %c0_i32 : i32, i32
  }
}

</mosaic_0001>

<bundles_post_ra>
// kernel: upsample_conv_transpose2x2.1
= control target key start
LH: loop header
LB: loop body
LE: loop exit
PB: predicated region body
PF: predicated region fallthrough
CT: control target
= control target key end

     0   :  { %s540_s12 = smov 0   ;;  %s589_s0 = inlined_call_operand.vmem [shape: bf16[512,8], index: 0, kind: input, shape index: {}]   ;;  %s590_s1 = inlined_call_operand.vmem [shape: bf16[8,128], index: 1, kind: input, shape index: {}]   ;;  %s591_s2 = inlined_call_operand.vmem [shape: f32[1,128], index: 2, kind: input, shape index: {}]   ;;  %s592_s3 = inlined_call_operand.vmem [shape: f32[512,128], index: 3, kind: output, shape index: {}]  }
   0x1 LB: > { %s437_s13 = sadd.s32 4294967295, %s518_s12   ;;  %p441_p0 = scmp.ge.s32.totalorder %s518_s12, 1  ;;  %s518_s12 = sphi %s540_s12, %s13_s12  }
   0x2   : > { %p138_p1 = scmp.lt.s32.totalorder %s518_s12, 5 }
   0x4   : > { %p139_p2 = pnand %p441_p0, %p138_p1 }
   0x5   : > { %s442_s16 = sshll.u32 (!%p139_p2), %s437_s13, 4 }
   0x6   : > { %142 = sbr.rel (%p139_p2) target bundleno = 227 (0xe3), region = 32  ;;  %p163_p3 = scmp.lt.s32.totalorder (!%p139_p2), %s442_s16, 63 }
   0xb   : > { %v191_v0 = vld [vmem:[%s590_s1] sm:$0xf]  ;;  %vm264_vm0 = vcmask 1043456   ;;  %s594_s16 = smov (!%p163_p3, %s442_s16), 63  ;;  %vm239_vm1 = vcmask 64512  }
   0xc   : > { %494 = vmatprep.subr.msk.bf16.mxu0 %vm264_vm0, %v191_v0  ;;  %495 = vmatprep.subr.msk.bf16.mxu1 %vm264_vm0, %v191_v0  ;;  %v266_v1 = vsel %vm264_vm0, %v191_v0, 0  ;;  %s443_s17 = sshll.u32 %s594_s16, 2  ;;  %s445_s21 = sshll.u32 %s594_s16, 3  ;;  %v446_v10 = vld [vmem:[%s591_s2] ss:$0 sm:$0xff] }
   0xd   : > { %475 = vmatpush3.bf16.msra.mxu0 %v266_v1  ;;  %493 = vmatpush3.bf16.msra.mxu1 %v266_v1  ;;  %s166_s20 = scalar_lea.vmem %s589_s0, %s443_s17  ;;  %s568_s26 = scalar_lea.vmem %s592_s3, %s445_s21 }
   0xe   : > { %v504_v2 = vld [vmem:[%s166_s20] sm:$0xff]   ;;  %v506_v4 = vld [vmem:[%s166_s20 + $0x8] sm:$0xff]   ;;  %v508_v6 = vld [vmem:[%s166_s20 + $0x10] sm:$0xff]  }
   0xf   : > { %v505_v3 = vld [vmem:[%s166_s20 + $0x20] sm:$0xff]   ;;  %476 = vmatprep.mubr.msk.bf16.mxu0 %vm239_vm1, %v504_v2  ;;  %v507_v5 = vld [vmem:[%s166_s20 + $0x28] sm:$0xff]   ;;  %v509_v7 = vld [vmem:[%s166_s20 + $0x30] sm:$0xff]  }
  0x10   : > { %484 = vmatprep.mubr.msk.bf16.mxu1 %vm239_vm1, %v505_v3  ;;  %477 = vmatmul.mubr.msk.bf16.vlgmr.msra.gmra.mxu0 %vm239_vm1, %v506_v4  ;;  %v510_v8 = vld [vmem:[%s166_s20 + $0x18] sm:$0xff]  }
  0x11   : > { %485 = vmatmul.mubr.msk.bf16.vlgmr.msra.gmra.mxu1 %vm239_vm1, %v507_v5  ;;  %480 = vmatprep.mubr.msk.bf16.mxu0 %vm239_vm1, %v508_v6  ;;  %v511_v9 = vld [vmem:[%s166_s20 + $0x38] sm:$0xff]  }
  0x12   : > { %488 = vmatprep.mubr.msk.bf16.mxu1 %vm239_vm1, %v509_v7 }
  0x18   : > { %481 = vmatmul.mubr.msk.bf16.gmra.mxu0 %vm239_vm1, %v510_v8 }
  0x19   : > { %489 = vmatmul.mubr.msk.bf16.gmra.mxu1 %vm239_vm1, %v511_v9 }
  0xd0   : > { %v478_v11 = vpop.f32.mrf.mxu0 }
  0xd1   : > { %v311_v12 = vadd.f32 %v478_v11, %v446_v10  ;;  %v486_v13 = vpop.f32.mrf.mxu1 }
  0xd2   : > { %v343_v14 = vadd.f32 %v486_v13, %v446_v10  ;;  %v302_v15 = vpop.f32.mrf.mxu0 }
  0xd3   : > { %367 = vst [vmem:[%s568_s26 + $0x10] sm:$0xff] %v311_v12  ;;  %v303_v16 = vadd.f32 %v446_v10, %v302_v15  ;;  %v334_v17 = vpop.f32.mrf.mxu1 }
  0xd4   : > { %375 = vst [vmem:[%s568_s26 + $0x50] sm:$0xff] %v343_v14  ;;  %v335_v18 = vadd.f32 %v446_v10, %v334_v17  ;;  %v479_v19 = vpop.f32.mrf.mxu0 }
  0xd5   : > { %365 = vst [vmem:[%s568_s26] sm:$0xff] %v303_v16  ;;  %v314_v20 = vadd.f32 %v479_v19, %v446_v10  ;;  %v487_v21 = vpop.f32.mrf.mxu1 }
  0xd6   : > { %373 = vst [vmem:[%s568_s26 + $0x40] sm:$0xff] %v335_v18  ;;  %v346_v22 = vadd.f32 %v487_v21, %v446_v10  ;;  %v305_v23 = vpop.f32.mrf.mxu0 }
  0xd7   : > { %368 = vst [vmem:[%s568_s26 + $0x18] sm:$0xff] %v314_v20  ;;  %v306_v24 = vadd.f32 %v446_v10, %v305_v23  ;;  %v337_v25 = vpop.f32.mrf.mxu1 }
  0xd8   : > { %376 = vst [vmem:[%s568_s26 + $0x58] sm:$0xff] %v346_v22  ;;  %v338_v26 = vadd.f32 %v446_v10, %v337_v25  ;;  %v482_v27 = vpop.f32.mrf.mxu0 }
  0xd9   : > { %366 = vst [vmem:[%s568_s26 + $0x8] sm:$0xff] %v306_v24  ;;  %v327_v28 = vadd.f32 %v482_v27, %v446_v10  ;;  %v490_v29 = vpop.f32.mrf.mxu1 }
  0xda   : > { %374 = vst [vmem:[%s568_s26 + $0x48] sm:$0xff] %v338_v26  ;;  %v359_v30 = vadd.f32 %v490_v29, %v446_v10  ;;  %v318_v31 = vpop.f32.mrf.mxu0 }
  0xdb   : > { %371 = vst [vmem:[%s568_s26 + $0x30] sm:$0xff] %v327_v28  ;;  %v319_v32 = vadd.f32 %v446_v10, %v318_v31  ;;  %v350_v33 = vpop.f32.mrf.mxu1 }
  0xdc   : > { %379 = vst [vmem:[%s568_s26 + $0x70] sm:$0xff] %v359_v30  ;;  %v351_v34 = vadd.f32 %v446_v10, %v350_v33  ;;  %v483_v35 = vpop.f32.mrf.mxu0 }
  0xdd   : > { %369 = vst [vmem:[%s568_s26 + $0x20] sm:$0xff] %v319_v32  ;;  %v330_v36 = vadd.f32 %v483_v35, %v446_v10  ;;  %v491_v37 = vpop.f32.mrf.mxu1 }
  0xde   : > { %377 = vst [vmem:[%s568_s26 + $0x60] sm:$0xff] %v351_v34  ;;  %v362_v38 = vadd.f32 %v491_v37, %v446_v10  ;;  %v321_v39 = vpop.f32.mrf.mxu0 }
  0xdf   : > { %372 = vst [vmem:[%s568_s26 + $0x38] sm:$0xff] %v330_v36  ;;  %v322_v40 = vadd.f32 %v446_v10, %v321_v39  ;;  %v353_v41 = vpop.f32.mrf.mxu1 }
  0xe0   : > { %380 = vst [vmem:[%s568_s26 + $0x78] sm:$0xff] %v362_v38  ;;  %v354_v42 = vadd.f32 %v446_v10, %v353_v41 }
  0xe1   : > { %370 = vst [vmem:[%s568_s26 + $0x28] sm:$0xff] %v322_v40 }
  0xe2   : > { %378 = vst [vmem:[%s568_s26 + $0x68] sm:$0xff] %v354_v42 }
  0xe3 PF: > { %s13_s12 = sadd.s32 1, %s518_s12  }
  0xe4   : > { %p10_p4 = scmp.ge.s32.totalorder %s13_s12, 6  }
  0xe6   :  { %12 = sbr.rel (!%p10_p4) target bundleno = 1 (0x1), region = 62 }

</bundles_post_ra>
